<compile_context>
chip_gen: v7x
topology: tpu7x:2x2x1
jax: 0.10.0
libtpu: 0.0.40
codegen_flags: <defaults>
</compile_context>

<pallas_src>
import jax
import jax.numpy as jnp
from jax.experimental import pallas as pl
from jax.experimental.pallas import tpu as pltpu

HIDDEN = 100       # as in the PyTorch module
LANE = 128         # TPU lane width


def _round_up(n, m):
    return ((n + m - 1) // m) * m


def cem_mlp_kernel(x_ref, w1_ref, b1_ref, w2_ref, b2_ref, o_ref):
    # x: (tb, S) S=4 ; w1: (S, Hp) ; b1: (1, Hp) ; w2: (Hp, Ap) ; b2: (1, Ap) ; o: (tb, A)
    x = x_ref[...].astype(jnp.float32)

    # ---- Layer 1 on the VPU: K=S=4 is far too small to be worth an MXU push. ----
    h = x[:, 0:1] * w1_ref[0:1, :] + b1_ref[...]
    for k in range(1, x_ref.shape[1]):            # static unroll over the 4 features
        h = h + x[:, k:k + 1] * w1_ref[k:k + 1, :]
    h = jnp.maximum(h, 0.0)

    # ---- Layer 2 on the MXU: (tb, Hp) @ (Hp, Ap), lane-aligned both sides. ----
    out = jnp.dot(h, w2_ref[...], preferred_element_type=jnp.float32) + b2_ref[...]

    # Store only the real action lanes (A=2): masked vst on a tiny slab instead of
    # writing a 128-lane-padded output back to HBM.
    a = o_ref.shape[1]
    o_ref[...] = out[:, :a].astype(o_ref.dtype)


def prepare_params(w1, b1, w2, b2):
    """One-time zero-padding of hidden/output dims up to multiples of 128.

    Numerically exact: ReLU(0)=0 and zero rows/cols of w2/b2 contribute nothing.
    Call once at init and reuse the returned arrays for every forward."""
    w1 = jnp.asarray(w1, jnp.float32)
    b1 = jnp.asarray(b1, jnp.float32).reshape(1, -1)
    w2 = jnp.asarray(w2, jnp.float32)
    b2 = jnp.asarray(b2, jnp.float32).reshape(1, -1)
    S, H = w1.shape
    A = w2.shape[1]
    Hp = _round_up(H, LANE)
    Ap = _round_up(A, LANE)
    w1p = jnp.zeros((S, Hp), jnp.float32).at[:, :H].set(w1)
    b1p = jnp.zeros((1, Hp), jnp.float32).at[:, :H].set(b1)
    w2p = jnp.zeros((Hp, Ap), jnp.float32).at[:H, :A].set(w2)
    b2p = jnp.zeros((1, Ap), jnp.float32).at[:, :A].set(b2)
    return w1p, b1p, w2p, b2p


def _default_row_tiles():
    """One batch tile per TensorCore: 2 on v7x (2 TC/chip), else 1."""
    try:
        kind = jax.devices()[0].device_kind.lower()
    except Exception:
        kind = ""
    return 2 if "v7" in kind else 1


def cem_forward(x, w1p, b1p, w2p, b2p, action_n, *, max_rows=4096, num_row_tiles=None):
    """x: (B, state_dim) float32. w*/b* are the pre-padded params from prepare_params.
    Returns logits (B, action_n), identical to the PyTorch forward."""
    B, S = x.shape
    Hp = w1p.shape[1]
    Ap = w2p.shape[1]
    A = int(action_n)

    # One tile per TensorCore, rows a multiple of 8, capped so VMEM stays tiny.
    n = num_row_tiles if num_row_tiles is not None else _default_row_tiles()
    n = max(1, min(n, pl.cdiv(B, 8)))                 # tiny batches: single tile
    tb = min(_round_up(pl.cdiv(B, n), 8), _round_up(max_rows, 8))
    n_tiles = pl.cdiv(B, tb)
    Bp = n_tiles * tb

    if Bp != B:
        # Pads at most (8 * n_tiles - 1) rows in the common case — tiny copy.
        x = jnp.zeros((Bp, S), x.dtype).at[:B].set(x)

    out = pl.pallas_call(
        cem_mlp_kernel,
        out_shape=jax.ShapeDtypeStruct((Bp, A), jnp.float32),
        grid_spec=pltpu.PrefetchScalarGridSpec(
            num_scalar_prefetch=0,
            grid=(n_tiles,),
            in_specs=[
                pl.BlockSpec((tb, S), lambda i: (i, 0)),     # per-tile x rows
                pl.BlockSpec((S, Hp), lambda i: (0, 0)),     # weights pinned in VMEM
                pl.BlockSpec((1, Hp), lambda i: (0, 0)),
                pl.BlockSpec((Hp, Ap), lambda i: (0, 0)),
                pl.BlockSpec((1, Ap), lambda i: (0, 0)),
            ],
            out_specs=pl.BlockSpec((tb, A), lambda i: (i, 0)),  # narrow (tb, 2) store
        ),
        compiler_params=pltpu.CompilerParams(
            dimension_semantics=("parallel",),   # batch tiles are independent (megacore)
        ),
    )(x, w1p, b1p, w2p, b2p)

    return out[:B] if Bp != B else out


def init_params(key, state_dim, hidden, action_n):
    """Deterministic parameter init mimicking PyTorch Linear (stored as (in, out))."""
    k1, k2, k3, k4 = jax.random.split(key, 4)
    bound1 = 1.0 / jnp.sqrt(state_dim)
    bound2 = 1.0 / jnp.sqrt(hidden)
    w1 = jax.random.uniform(k1, (state_dim, hidden), jnp.float32, -bound1, bound1)
    b1 = jax.random.uniform(k2, (1, hidden), jnp.float32, -bound1, bound1)
    w2 = jax.random.uniform(k3, (hidden, action_n), jnp.float32, -bound2, bound2)
    b2 = jax.random.uniform(k4, (1, action_n), jnp.float32, -bound2, bound2)
    return w1, b1, w2, b2


def _reference(x, w1, b1, w2, b2):
    return jnp.maximum(x @ w1 + b1, 0.0) @ w2 + b2


# TODO(synk): softmax/np.random.choice action sampling and the Adam/CrossEntropy
# training step (update_policy) are host-side / training logic, not part of the
# forward-pass kernel spec; only forward() is implemented here.

if __name__ == "__main__":
    state_dim = 4
    action_n = 2

    key = jax.random.PRNGKey(0)
    k_params, k_x1, k_x2 = jax.random.split(key, 3)
    w1, b1, w2, b2 = init_params(k_params, state_dim, HIDDEN, action_n)

    # Pad the weights ONCE (not per forward call).
    padded = prepare_params(w1, b1, w2, b2)
    fwd = jax.jit(lambda xx: cem_forward(xx, *padded, action_n=action_n))

    # Small single-tile case (B=8) — matches a typical get_action / small rollout.
    x_small = jax.random.normal(k_x1, (8, state_dim), jnp.float32)
    logits_small = fwd(x_small)
    jax.block_until_ready(logits_small)
    ref_small = _reference(x_small, w1, b1, w2, b2)
    assert logits_small.shape == (8, action_n)
    assert jnp.allclose(logits_small, ref_small, atol=1e-5, rtol=1e-5)

    # Batched CEM-population case (B=1000) — exercises per-core tiling and the
    # narrow output store; no wrapper-side batch pad when B is a multiple of 8
    # and a single tile is used.
    x_big = jax.random.normal(k_x2, (1000, state_dim), jnp.float32)
    logits_big = fwd(x_big)
    jax.block_until_ready(logits_big)
    ref_big = _reference(x_big, w1, b1, w2, b2)
    assert logits_big.shape == (1000, action_n)
    assert jnp.allclose(logits_big, ref_big, atol=1e-4, rtol=1e-5)

    print("KERNEL_OK")
</pallas_src>

<mosaic_0001>
module attributes {stable_mosaic.version = 11 : i64} {
  func.func @cem_mlp_kernel(%arg0: i32, %arg1: memref<8x4xf32, #tpu.memory_space<vmem>>, %arg2: memref<4x128xf32, #tpu.memory_space<vmem>>, %arg3: memref<1x128xf32, #tpu.memory_space<vmem>>, %arg4: memref<128x128xf32, #tpu.memory_space<vmem>>, %arg5: memref<1x128xf32, #tpu.memory_space<vmem>>, %arg6: memref<8x2xf32, #tpu.memory_space<vmem>>) attributes {dimension_semantics = [#tpu.dimension_semantics<parallel>], iteration_bounds = array<i64: 1>, scalar_prefetch = 0 : i64, scratch_operands = 0 : i64, tpu.core_type = #tpu.core_type<tc>, window_params = [{transform_indices = @transform_0, window_bounds = array<i64: 8, 4>}, {pipeline_mode = #tpu.pipeline_mode<synchronous>, transform_indices = @transform_1, window_bounds = array<i64: 4, 128>}, {pipeline_mode = #tpu.pipeline_mode<synchronous>, transform_indices = @transform_2, window_bounds = array<i64: 1, 128>}, {pipeline_mode = #tpu.pipeline_mode<synchronous>, transform_indices = @transform_3, window_bounds = array<i64: 128, 128>}, {pipeline_mode = #tpu.pipeline_mode<synchronous>, transform_indices = @transform_4, window_bounds = array<i64: 1, 128>}, {transform_indices = @transform_5, window_bounds = array<i64: 8, 2>}]} {
    %c0 = arith.constant 0 : index
    %c0_0 = arith.constant 0 : index
    %0 = vector.load %arg1[%c0, %c0_0] : memref<8x4xf32, #tpu.memory_space<vmem>>, vector<8x4xf32>
    %1 = vector.extract_strided_slice %0 {offsets = [0, 0], sizes = [8, 1], strides = [1, 1]} : vector<8x4xf32> to vector<8x1xf32>
    %c0_1 = arith.constant 0 : index
    %c0_2 = arith.constant 0 : index
    %2 = vector.load %arg2[%c0_1, %c0_2] : memref<4x128xf32, #tpu.memory_space<vmem>>, vector<1x128xf32>
    %3 = vector.broadcast %1 : vector<8x1xf32> to vector<8x128xf32>
    %4 = vector.broadcast %2 : vector<1x128xf32> to vector<8x128xf32>
    %5 = arith.mulf %3, %4 : vector<8x128xf32>
    %c0_3 = arith.constant 0 : index
    %c0_4 = arith.constant 0 : index
    %6 = vector.load %arg3[%c0_3, %c0_4] : memref<1x128xf32, #tpu.memory_space<vmem>>, vector<1x128xf32>
    %7 = vector.broadcast %6 : vector<1x128xf32> to vector<8x128xf32>
    %8 = arith.addf %5, %7 : vector<8x128xf32>
    %9 = vector.extract_strided_slice %0 {offsets = [0, 1], sizes = [8, 1], strides = [1, 1]} : vector<8x4xf32> to vector<8x1xf32>
    %c1 = arith.constant 1 : index
    %c0_5 = arith.constant 0 : index
    %10 = vector.load %arg2[%c1, %c0_5] : memref<4x128xf32, #tpu.memory_space<vmem>>, vector<1x128xf32>
    %11 = vector.broadcast %9 : vector<8x1xf32> to vector<8x128xf32>
    %12 = vector.broadcast %10 : vector<1x128xf32> to vector<8x128xf32>
    %13 = arith.mulf %11, %12 : vector<8x128xf32>
    %14 = arith.addf %8, %13 : vector<8x128xf32>
    %15 = vector.extract_strided_slice %0 {offsets = [0, 2], sizes = [8, 1], strides = [1, 1]} : vector<8x4xf32> to vector<8x1xf32>
    %c2 = arith.constant 2 : index
    %c0_6 = arith.constant 0 : index
    %16 = vector.load %arg2[%c2, %c0_6] : memref<4x128xf32, #tpu.memory_space<vmem>>, vector<1x128xf32>
    %17 = vector.broadcast %15 : vector<8x1xf32> to vector<8x128xf32>
    %18 = vector.broadcast %16 : vector<1x128xf32> to vector<8x128xf32>
    %19 = arith.mulf %17, %18 : vector<8x128xf32>
    %20 = arith.addf %14, %19 : vector<8x128xf32>
    %21 = vector.extract_strided_slice %0 {offsets = [0, 3], sizes = [8, 1], strides = [1, 1]} : vector<8x4xf32> to vector<8x1xf32>
    %c3 = arith.constant 3 : index
    %c0_7 = arith.constant 0 : index
    %22 = vector.load %arg2[%c3, %c0_7] : memref<4x128xf32, #tpu.memory_space<vmem>>, vector<1x128xf32>
    %23 = vector.broadcast %21 : vector<8x1xf32> to vector<8x128xf32>
    %24 = vector.broadcast %22 : vector<1x128xf32> to vector<8x128xf32>
    %25 = arith.mulf %23, %24 : vector<8x128xf32>
    %26 = arith.addf %20, %25 : vector<8x128xf32>
    %cst = arith.constant 0.000000e+00 : f32
    %27 = vector.broadcast %cst : f32 to vector<8x128xf32>
    %28 = arith.maximumf %26, %27 : vector<8x128xf32>
    %c0_8 = arith.constant 0 : index
    %c0_9 = arith.constant 0 : index
    %29 = vector.load %arg4[%c0_8, %c0_9] : memref<128x128xf32, #tpu.memory_space<vmem>>, vector<128x128xf32>
    %cst_10 = arith.constant dense<0.000000e+00> : vector<8x128xf32>
    %30 = tpu.matmul %28, %29, %cst_10 {dimension_numbers = #tpu.dot_dimension_numbers<[1], [0], [0], [1], [0, 0, 1, 1], [], []>} : vector<8x128xf32>, vector<128x128xf32>, vector<8x128xf32> -> vector<8x128xf32>
    %c0_11 = arith.constant 0 : index
    %c0_12 = arith.constant 0 : index
    %31 = vector.load %arg5[%c0_11, %c0_12] : memref<1x128xf32, #tpu.memory_space<vmem>>, vector<1x128xf32>
    %32 = vector.broadcast %31 : vector<1x128xf32> to vector<8x128xf32>
    %33 = arith.addf %30, %32 : vector<8x128xf32>
    %34 = vector.extract_strided_slice %33 {offsets = [0, 0], sizes = [8, 2], strides = [1, 1]} : vector<8x128xf32> to vector<8x2xf32>
    %c0_13 = arith.constant 0 : index
    %c0_14 = arith.constant 0 : index
    %35 = vector.load %arg6[%c0_13, %c0_14] : memref<8x2xf32, #tpu.memory_space<vmem>>, vector<8x2xf32>
    tpu.vector_store %arg6[%c0_13, %c0_14], %34 {strides = array<i32>} : memref<8x2xf32, #tpu.memory_space<vmem>>, vector<8x2xf32>,
    return
  }
  func.func @transform_0(%arg0: i32) -> (i32, i32) {
    %c0_i32 = arith.constant 0 : i32
    %c0_i32_0 = arith.constant 0 : i32
    return %arg0, %c0_i32 : i32, i32
  }
  func.func @transform_1(%arg0: i32) -> (i32, i32) {
    %c0_i32 = arith.constant 0 : i32
    %c0_i32_0 = arith.constant 0 : i32
    %c0_i32_1 = arith.constant 0 : i32
    return %c0_i32, %c0_i32_0 : i32, i32
  }
  func.func @transform_2(%arg0: i32) -> (i32, i32) {
    %c0_i32 = arith.constant 0 : i32
    %c0_i32_0 = arith.constant 0 : i32
    %c0_i32_1 = arith.constant 0 : i32
    return %c0_i32, %c0_i32_0 : i32, i32
  }
  func.func @transform_3(%arg0: i32) -> (i32, i32) {
    %c0_i32 = arith.constant 0 : i32
    %c0_i32_0 = arith.constant 0 : i32
    %c0_i32_1 = arith.constant 0 : i32
    return %c0_i32, %c0_i32_0 : i32, i32
  }
  func.func @transform_4(%arg0: i32) -> (i32, i32) {
    %c0_i32 = arith.constant 0 : i32
    %c0_i32_0 = arith.constant 0 : i32
    %c0_i32_1 = arith.constant 0 : i32
    return %c0_i32, %c0_i32_0 : i32, i32
  }
  func.func @transform_5(%arg0: i32) -> (i32, i32) {
    %c0_i32 = arith.constant 0 : i32
    %c0_i32_0 = arith.constant 0 : i32
    return %arg0, %c0_i32 : i32, i32
  }
}

</mosaic_0001>

<bundles_post_ra>
// kernel: _lambda_.1
= control target key start
LH: loop header
LB: loop body
LE: loop exit
PB: predicated region body
PF: predicated region fallthrough
CT: control target
= control target key end

     0   :  { %10 = vsyncpa [#allocation3], 0  ;;  %s309_s18 = smov [#allocation2]   ;;  %s385_s0 = inlined_call_operand.vmem [shape: f32[8,4], index: 0, kind: input, shape index: {}]   ;;  %s386_s1 = inlined_call_operand.vmem [shape: f32[4,128], index: 1, kind: input, shape index: {}]   ;;  %s387_s2 = inlined_call_operand.vmem [shape: f32[1,128], index: 2, kind: input, shape index: {}]   ;;  %s388_s3 = inlined_call_operand.hbm [shape: f32[128,128], index: 3, kind: input, shape index: {}]   ;;  %s389_s4 = inlined_call_operand.vmem [shape: f32[1,128], index: 4, kind: input, shape index: {}]   ;;  %s390_s5 = inlined_call_operand.vmem [shape: f32[8,2], index: 5, kind: output, shape index: {}]  }
   0x1   :  { %s22_s19 = sshll.u32 %s309_s18, 4  ;;  %s285_s22 = scalar_lea.hbm %s388_s3, 2048  ;;  %s23_s19 = int_to_ptr.vmem [resolvable:$true] %s22_s19 }
   0x2   :  { %p286_p0 = scmp.ne.s32.totalorder %s388_s3, %s285_s22  ;;  %p289_p1 = scmp.lt.u32.totalorder %s285_s22, %s388_s3 }
   0x4   :  { %p291_p2 = pnand %p289_p1, %p286_p0 }
   0x6   :  { %294 = shalt.err (!%p291_p2)
}
   0x7   :  { %s295_s27 = scalar_lea.vmem %s23_s19, 2048  ;;  %p300_p4 = scmp.lt.s32.totalorder %s23_s19, %s23_s19 }
   0x8   :  { %p296_p3 = scmp.ne.s32.totalorder %s23_s19, %s295_s27  ;;  %p301_p5 = scmp.lt.s32.totalorder %s295_s27, %s295_s27 }
   0xa   :  { %p302_p6 = por %p301_p5, %p300_p4 }
   0xc   :  { %p303_p7 = pnand %p302_p6, %p296_p3 }
   0xe   :  { %306 = shalt.err (!%p303_p7)
}
   0xf   :  { %s310_s28 = smov 128   ;;  %s311_s29 = smov 8  }
  0x10   :  { %28 = dma.hbm_to_vmem [thread:$0]  %s388_s3, 2048, %s23_s19, [#allocation3], %s310_s28, %s310_s28, %s311_s29  }
  0x11   :  { %307 = dma.done.wait [#allocation3], 2048  }
  0x12   :  { %308 = vsyncadd [#allocation3], 4294965248  ;;  %v312_v0 = vmov 0   ;;  %v313_v1 = vmov 2   ;;  %v314_v2 = vmov 0.0|0.0   ;;  %v34_v3 = vld [vmem:[%s385_s0] sm:$0xff] }
  0x13   :  { %280 = vset.pattern.permute.xlu0 %v312_v0  ;;  %282 = vset.pattern.permute.xlu1 %v313_v1  ;;  %v88_v4 = vld [vmem:[#allocation2] sm:$0xff]  ;;  %v89_v5 = vld [vmem:[#allocation2 + $0x8] sm:$0xff]  ;;  %v90_v7 = vld [vmem:[#allocation2 + $0x10] sm:$0xff]  ;;  %v315_v12 = vmov 1   ;;  %v316_v13 = vmov 3   ;;  %vm317_vm0 = vmmov 0  }
  0x14   :  { %246 = vmatprep.subr.bf16.mxu0 %v314_v2  ;;  %38 = vperm.xlu0 %280, %v34_v3   ;;  %v247_v6 = vpack.c.bf16 %v89_v5, %v88_v4  ;;  %v91_v8 = vld [vmem:[#allocation2 + $0x18] sm:$0xff]  ;;  %v92_v10 = vld [vmem:[#allocation2 + $0x20] sm:$0xff]  ;;  %v93_v11 = vld [vmem:[#allocation2 + $0x28] sm:$0xff]  ;;  %v318_v21 = vmov 0.0   ;;  %vm181_vm1 = vcmask 15360  }
  0x15   :  { %67 = vperm.xlu1 %282, %v34_v3   ;;  %v250_v9 = vpack.c.bf16 %v91_v8, %v90_v7  ;;  %v253_v14 = vpack.c.bf16 %v93_v11, %v92_v10  ;;  %v94_v15 = vld [vmem:[#allocation2 + $0x30] sm:$0xff]  ;;  %v95_v16 = vld [vmem:[#allocation2 + $0x38] sm:$0xff]  ;;  %v96_v18 = vld [vmem:[#allocation2 + $0x40] sm:$0xff]  ;;  %243 = vmatprep.mubr.msk.f32.mxu0 %vm317_vm0, %v318_v21 }
  0x16   :  { %248 = vmatpush3.bf16.msra.mxu0 %v247_v6  ;;  %v256_v17 = vpack.c.bf16 %v95_v16, %v94_v15  ;;  %v97_v19 = vld [vmem:[#allocation2 + $0x48] sm:$0xff]  ;;  %v98_v22 = vld [vmem:[#allocation2 + $0x50] sm:$0xff]  ;;  %v99_v23 = vld [vmem:[#allocation2 + $0x58] sm:$0xff] }
  0x17   :  { %249 = vmatprep.subr.bf16.mxu0 %v314_v2  ;;  %v259_v20 = vpack.c.bf16 %v97_v19, %v96_v18  ;;  %v262_v24 = vpack.c.bf16 %v99_v23, %v98_v22  ;;  %v100_v25 = vld [vmem:[#allocation2 + $0x60] sm:$0xff]  ;;  %v101_v26 = vld [vmem:[#allocation2 + $0x68] sm:$0xff]  ;;  %v102_v28 = vld [vmem:[#allocation2 + $0x70] sm:$0xff] }
  0x18   :  { %281 = vset.pattern.permute.xlu0 %v315_v12  ;;  %v265_v27 = vpack.c.bf16 %v101_v26, %v100_v25  ;;  %v103_v29 = vld [vmem:[#allocation2 + $0x78] sm:$0xff]  ;;  %v188_v31 = vld [vmem:[%s386_s1] ss:$0 sm:$0xff]  ;;  %v190_v36 = vld [vmem:[%s386_s1 + $0x1] ss:$0 sm:$0xff] }
  0x19   :  { %283 = vset.pattern.permute.xlu1 %v316_v13  ;;  %56 = vperm.xlu0 %281, %v34_v3   ;;  %v268_v30 = vpack.c.bf16 %v103_v29, %v102_v28  ;;  %v189_v35 = vld [vmem:[%s387_s2] ss:$0 sm:$0xff]  ;;  %v191_v37 = vld [vmem:[%s386_s1 + $0x2] ss:$0 sm:$0xff]  ;;  %v192_v39 = vld [vmem:[%s386_s1 + $0x3] ss:$0 sm:$0xff] }
  0x1a   :  { %78 = vperm.xlu1 %283, %v34_v3   ;;  %251 = vmatpush3.bf16.msra.mxu0 %v250_v9  ;;  %v193_v49 = vld [vmem:[%s389_s4] ss:$0 sm:$0xff] }
  0x1b   :  { %252 = vmatprep.subr.bf16.mxu0 %v314_v2 }
  0x1d   :  { %284 = vset.pattern.permute.xlu0 %v316_v13 }
  0x1e   :  { %254 = vmatpush3.bf16.msra.mxu0 %v253_v14 }
  0x1f   :  { %255 = vmatprep.subr.bf16.mxu0 %v314_v2 }
  0x22   :  { %257 = vmatpush3.bf16.msra.mxu0 %v256_v17 }
  0x23   :  { %258 = vmatprep.subr.bf16.mxu0 %v314_v2 }
  0x26   :  { %260 = vmatpush3.bf16.msra.mxu0 %v259_v20 }
  0x27   :  { %261 = vmatprep.subr.bf16.mxu0 %v314_v2 }
  0x2a   :  { %263 = vmatpush3.bf16.msra.mxu0 %v262_v24 }
  0x2b   :  { %264 = vmatprep.subr.bf16.mxu0 %v314_v2 }
  0x2e   :  { %266 = vmatpush3.bf16.msra.mxu0 %v265_v27 }
  0x2f   :  { %267 = vmatprep.subr.bf16.mxu0 %v314_v2 }
  0x32   :  { %269 = vmatpush3.bf16.msra.mxu0 %v268_v30 }
  0x93   :  { %v39_v32 = vpop.permute.xlu0 %38 }
  0x94   :  { %v68_v33 = vpop.permute.xlu1 %67  ;;  %v45_v34 = vmul.f32 %v188_v31, %v39_v32 }
  0x95   :  { %v74_v43 = vmul.f32 %v191_v37, %v68_v33 }
  0x96   :  { %v53_v41 = vadd.f32 %v189_v35, %v45_v34 }
  0x98   :  { %v57_v38 = vpop.permute.xlu0 %56 }
  0x99   :  { %v79_v40 = vpop.permute.xlu1 %78  ;;  %v63_v42 = vmul.f32 %v190_v36, %v57_v38 }
  0x9a   :  { %v85_v45 = vmul.f32 %v192_v39, %v79_v40 }
  0x9b   :  { %v64_v44 = vadd.f32 %v63_v42, %v53_v41 }
  0x9d   :  { %v75_v46 = vadd.f32 %v74_v43, %v64_v44 }
  0x9f   :  { %v86_v47 = vadd.f32 %v85_v45, %v75_v46 }
  0xa1   :  { %v87_v48 = vmax.f32 %v86_v47, 0.0 }
  0xa3   :  { %244 = vmatmul.mubr.f32.vlgmr.msra.gmra.mrb[0].mxu0 %v87_v48 }
 0x176   :  { %v177_v50 = vpop.f32.mrb[0].mxu0 }
 0x177   :  { %v178_v51 = vadd.f32 %v193_v49, %v177_v50  ;;  %v245_v52 = vpop.f32.mrb[1].mxu0 }
 0x179   :  { %182 = vst.msk [vmem:[%s390_s5] sm:$0xff] %vm181_vm1, %v178_v51 }
 0x17a   :  { %187 = vsyncpa [#allocation3], 1 }

</bundles_post_ra>
